<compile_context>
chip_gen: v7x
topology: tpu7x:2x2x1
jax: 0.10.0
libtpu: 0.0.40
codegen_flags: <defaults>
</compile_context>

<pallas_src>
import math
import jax
import jax.numpy as jnp
from jax import lax
from jax.experimental import pallas as pl
from jax.experimental.pallas import tpu as pltpu

_LANE = 128
_MiB = 1024 * 1024


def _attn_kernel(x_ref, wq_ref, wkv_ref, wo_ref, out_ref, attn_ref, k_scr, v_scr):
    # Block shapes:
    #   x_ref    : (Bb, S, Hp)  resident across the query-tile axis (index_map const)
    #   wq_ref   : (Hp, Hp)     bf16, 1/sqrt(H) pre-folded into its columns
    #   wkv_ref  : (Hp, 2*Hp)   bf16, fused Wk|Wv
    #   wo_ref   : (Hp, Hp)     bf16
    #   out_ref  : (Bb, tq, Hp)
    #   attn_ref : (Bb, tq, S)
    #   k_scr/v_scr : (Bb, S, Hp) bf16 persistent VMEM scratch (this batch block's K/V)
    Bb, S, Hp = x_ref.shape
    tq = out_ref.shape[1]
    qi = pl.program_id(1)

    # ---- K/V projection: only once per batch block (qi axis is sequential).
    @pl.when(qi == 0)
    def _():
        # Hp is lane-aligned (multiple of 128) so this reshape is a free relabel.
        x2d = x_ref[...].reshape(Bb * S, Hp).astype(jnp.bfloat16)
        kv = jnp.dot(x2d, wkv_ref[...], preferred_element_type=jnp.float32)
        kv = kv.astype(jnp.bfloat16).reshape(Bb, S, 2 * Hp)
        k_scr[...] = kv[..., :Hp]      # lane-aligned slice (Hp % 128 == 0)
        v_scr[...] = kv[..., Hp:]

    # ---- Q projection for the current query tile only (no recompute across tiles).
    if tq == S:
        xq = x_ref[...]
    else:
        qoff = pl.multiple_of(qi * tq, tq)
        xq = x_ref[:, pl.ds(qoff, tq), :]
    q2d = xq.reshape(Bb * tq, Hp).astype(jnp.bfloat16)
    q = jnp.dot(q2d, wq_ref[...], preferred_element_type=jnp.float32)
    q = q.astype(jnp.bfloat16).reshape(Bb, tq, Hp)

    # ---- scores = (Q/sqrt(H)) K^T : contract hidden dims directly (no K relayout).
    scores = lax.dot_general(
        q, k_scr[...],
        dimension_numbers=(((2,), (2,)), ((0,), (0,))),
        preferred_element_type=jnp.float32)                        # (Bb, tq, S) f32

    # ---- numerically stable softmax over the (full) key axis, in f32.
    m = jnp.max(scores, axis=-1, keepdims=True)
    p = jnp.exp(scores - m)
    # Exact reciprocal so the returned attention rows sum to 1 (per-row cost only).
    inv = pl.reciprocal(jnp.sum(p, axis=-1, keepdims=True), approx=False)
    attn = p * inv                                                  # (Bb, tq, S) f32
    # TODO(synk): on v6e/v7x, if profiling shows the EUP slot binding, do the exp in bf16.

    # ---- context = A @ V, then output projection.
    ctx = lax.dot_general(
        attn.astype(jnp.bfloat16), v_scr[...],
        dimension_numbers=(((2,), (1,)), ((0,), (0,))),
        preferred_element_type=jnp.float32)                         # (Bb, tq, Hp) f32
    out2d = jnp.dot(ctx.reshape(Bb * tq, Hp).astype(jnp.bfloat16), wo_ref[...],
                    preferred_element_type=jnp.float32)
    out_ref[...] = out2d.reshape(Bb, tq, Hp).astype(out_ref.dtype)
    attn_ref[...] = attn.astype(attn_ref.dtype)


def _vmem_capacity_bytes():
    try:
        cap = getattr(pltpu.get_tpu_info(), "vmem_capacity_bytes", None)
        if cap:
            return int(cap)
    except Exception:
        pass
    return 64 * _MiB   # conservative (v7x-sized) fallback


def _vmem_limit_bytes(capacity):
    # Leave headroom for compiler-internal scratch: ~100 MiB on 128 MiB v5e/v6e,
    # ~40 MiB on 64 MiB v7x.
    return int(max(32 * _MiB, min(capacity - 24 * _MiB, 100 * _MiB)))


def _pick_block_q(S, vmem_limit):
    """Query tile: full S when small, else a power-of-two divisor (bigger on roomy VMEM)."""
    if S <= 512:
        return S
    prefs = ((512, 256, 128, 64, 32, 16) if vmem_limit >= 80 * _MiB
             else (256, 128, 64, 32, 16))
    for t in prefs:
        if S % t == 0:
            return t
    return S


def _pick_block_b(B, S, vmem_limit):
    """Pack batch elements so the per-block projection has plenty of MXU M rows."""
    rows_target = 2048 if vmem_limit >= 80 * _MiB else 512
    bb = max(1, min(B, rows_target // max(S, 1)))
    if B >= 2:
        # Keep >= 2 batch blocks so the "parallel" axis can shard across v7x's two TCs.
        bb = min(bb, max(B // 2, 1))
    while bb > 1 and B % bb != 0:
        bb -= 1
    return max(bb, 1)


def _vmem_estimate(bb, tq, S, Hp, x_bytes, out_bytes, attn_bytes):
    """Rough VMEM footprint: double-buffered blocks + persistent K/V scratch + f32 temps."""
    x_blk = bb * S * Hp * x_bytes
    w = (2 * Hp * Hp + Hp * 2 * Hp) * 2
    out_blk = bb * tq * Hp * out_bytes
    attn_blk = bb * tq * S * attn_bytes
    kv_scr = 2 * bb * S * Hp * 2
    interm = bb * tq * S * 4 + bb * S * 2 * Hp * 4
    return 2 * (x_blk + w + out_blk + attn_blk) + kv_scr + interm


def mc_attention_forward(x, wq, wk, wv, wo, *, block_b=None, block_q=None,
                         attn_dtype=jnp.bfloat16):
    """x: (B, S, H). Returns (out (B, S, H), attn (B, S, S))."""
    B, S, H = x.shape
    out_dtype = x.dtype

    capacity = _vmem_capacity_bytes()
    vmem_limit = _vmem_limit_bytes(capacity)

    # ---- pad H to a lane multiple (128): lane-aligned K/V slice, lane-dense out stores.
    Hp = ((H + _LANE - 1) // _LANE) * _LANE
    scale = 1.0 / math.sqrt(H)         # scale uses the true hidden size
    if Hp != H:
        pad2d = ((0, Hp - H), (0, Hp - H))
        wq_p = jnp.pad(wq * scale, pad2d)
        wk_p = jnp.pad(wk, pad2d)
        wv_p = jnp.pad(wv, pad2d)
        wo_p = jnp.pad(wo, pad2d)
        # pad + bf16 cast fused into one pass (x is rewritten anyway; halves its DMA).
        x_in = jnp.pad(x, ((0, 0), (0, 0), (0, Hp - H))).astype(jnp.bfloat16)
    else:
        wq_p, wk_p, wv_p, wo_p = wq * scale, wk, wv, wo
        x_in = x   # keep original dtype; cast to bf16 inside the kernel (no extra HBM pass)

    wq_b = wq_p.astype(jnp.bfloat16)                                   # (Hp, Hp)
    wkv_b = jnp.concatenate([wk_p, wv_p], axis=1).astype(jnp.bfloat16)  # (Hp, 2Hp)
    wo_b = wo_p.astype(jnp.bfloat16)                                    # (Hp, Hp)

    # ---- tile sizing (generation-aware via VMEM capacity) + budget shrink.
    tq = block_q if block_q is not None else _pick_block_q(S, vmem_limit)
    bb = block_b if block_b is not None else _pick_block_b(B, S, vmem_limit)
    if block_b is None and block_q is None:
        budget = int(0.7 * vmem_limit)
        xb = jnp.dtype(x_in.dtype).itemsize
        ob = jnp.dtype(out_dtype).itemsize
        ab = jnp.dtype(attn_dtype).itemsize
        while _vmem_estimate(bb, tq, S, Hp, xb, ob, ab) > budget:
            if tq >= 32 and tq % 2 == 0 and S % (tq // 2) == 0:
                tq //= 2
            elif bb > 1:
                bb -= 1
                while bb > 1 and B % bb != 0:
                    bb -= 1
            else:
                break
    assert B % bb == 0, f"block_b={bb} must divide B={B}"
    assert S % tq == 0, f"block_q={tq} must divide S={S}"

    grid = (B // bb, S // tq)

    out_p, attn = pl.pallas_call(
        _attn_kernel,
        out_shape=(
            jax.ShapeDtypeStruct((B, S, Hp), out_dtype),
            jax.ShapeDtypeStruct((B, S, S), attn_dtype),
        ),
        grid_spec=pltpu.PrefetchScalarGridSpec(
            num_scalar_prefetch=0,
            grid=grid,
            in_specs=[
                # x block is constant along qi -> DMA'd once per batch block.
                pl.BlockSpec((bb, S, Hp), lambda b, qi: (b, 0, 0)),
                pl.BlockSpec((Hp, Hp), lambda b, qi: (0, 0)),
                pl.BlockSpec((Hp, 2 * Hp), lambda b, qi: (0, 0)),
                pl.BlockSpec((Hp, Hp), lambda b, qi: (0, 0)),
            ],
            out_specs=[
                pl.BlockSpec((bb, tq, Hp), lambda b, qi: (b, qi, 0)),
                pl.BlockSpec((bb, tq, S), lambda b, qi: (b, qi, 0)),
            ],
            scratch_shapes=[
                pltpu.VMEM((bb, S, Hp), jnp.bfloat16),   # K (persists across qi)
                pltpu.VMEM((bb, S, Hp), jnp.bfloat16),   # V (persists across qi)
            ],
        ),
        compiler_params=pltpu.CompilerParams(
            # qi must be sequential ("arbitrary"): K/V scratch is filled at qi == 0.
            dimension_semantics=("parallel", "arbitrary"),
            vmem_limit_bytes=int(vmem_limit),
        ),
    )(x_in, wq_b, wkv_b, wo_b)

    out = out_p[..., :H] if Hp != H else out_p
    return out, attn


def _reference(x, wq, wk, wv, wo):
    q = x @ wq
    k = x @ wk
    v = x @ wv
    scores = jnp.einsum("bqh,bkh->bqk", q, k) / math.sqrt(x.shape[-1])
    attn = jax.nn.softmax(scores, axis=-1)
    out = jnp.einsum("bqk,bkh->bqh", attn, v) @ wo
    return out, attn


if __name__ == "__main__":
    B, S, H = 2, 8, 32

    key = jax.random.PRNGKey(0)
    kx, kq, kk, kv, ko = jax.random.split(key, 5)

    x = jax.random.normal(kx, (B, S, H), dtype=jnp.float32)
    std = 1.0 / math.sqrt(H)
    wq = jax.random.normal(kq, (H, H), dtype=jnp.float32) * std
    wk = jax.random.normal(kk, (H, H), dtype=jnp.float32) * std
    wv = jax.random.normal(kv, (H, H), dtype=jnp.float32) * std
    wo = jax.random.normal(ko, (H, H), dtype=jnp.float32) * std

    out, attn = mc_attention_forward(x, wq, wk, wv, wo)
    out = jax.block_until_ready(out)
    attn = jax.block_until_ready(attn)

    ref_out, ref_attn = _reference(x, wq, wk, wv, wo)
    # bf16 MXU inputs + bf16 attention output -> slightly looser tolerances than pure f32.
    assert jnp.allclose(out, ref_out, atol=5e-2, rtol=5e-2), "output mismatch"
    assert jnp.allclose(attn.astype(jnp.float32), ref_attn, atol=2e-2, rtol=2e-2), "attn mismatch"

    print("KERNEL_OK")
</pallas_src>

<mosaic_0001>
module attributes {stable_mosaic.version = 11 : i64} {
  func.func @_attn_kernel(%arg0: i32, %arg1: i32, %arg2: memref<1x8x128xbf16, #tpu.memory_space<vmem>>, %arg3: memref<128x128xbf16, #tpu.memory_space<vmem>>, %arg4: memref<128x256xbf16, #tpu.memory_space<vmem>>, %arg5: memref<128x128xbf16, #tpu.memory_space<vmem>>, %arg6: memref<1x8x128xf32, #tpu.memory_space<vmem>>, %arg7: memref<1x8x8xbf16, #tpu.memory_space<vmem>>, %arg8: memref<1x8x128xbf16, #tpu.memory_space<vmem>>, %arg9: memref<1x8x128xbf16, #tpu.memory_space<vmem>>) attributes {dimension_semantics = [#tpu.dimension_semantics<parallel>, #tpu.dimension_semantics<arbitrary>], iteration_bounds = array<i64: 2, 1>, scalar_prefetch = 0 : i64, scratch_operands = 2 : i64, tpu.core_type = #tpu.core_type<tc>, window_params = [{transform_indices = @transform_0, window_bounds = array<i64: 1, 8, 128>}, {pipeline_mode = #tpu.pipeline_mode<synchronous>, transform_indices = @transform_1, window_bounds = array<i64: 128, 128>}, {pipeline_mode = #tpu.pipeline_mode<synchronous>, transform_indices = @transform_2, window_bounds = array<i64: 128, 256>}, {pipeline_mode = #tpu.pipeline_mode<synchronous>, transform_indices = @transform_3, window_bounds = array<i64: 128, 128>}, {transform_indices = @transform_4, window_bounds = array<i64: 1, 8, 128>}, {transform_indices = @transform_5, window_bounds = array<i64: 1, 8, 8>}]} {
    %c0_i32 = arith.constant 0 : i32
    %0 = arith.cmpi eq, %arg1, %c0_i32 : i32
    %1 = arith.extui %0 : i1 to i32
    %c0_i32_0 = arith.constant 0 : i32
    %2 = arith.cmpi ne, %1, %c0_i32_0 : i32
    scf.if %2 {
      %c0_24 = arith.constant 0 : index
      %c0_25 = arith.constant 0 : index
      %c0_26 = arith.constant 0 : index
      %32 = vector.load %arg2[%c0_24, %c0_25, %c0_26] : memref<1x8x128xbf16, #tpu.memory_space<vmem>>, vector<1x8x128xbf16>
      %33 = vector.shape_cast %32 : vector<1x8x128xbf16> to vector<8x128xbf16>
      %c0_27 = arith.constant 0 : index
      %c0_28 = arith.constant 0 : index
      %34 = vector.load %arg4[%c0_27, %c0_28] : memref<128x256xbf16, #tpu.memory_space<vmem>>, vector<128x256xbf16>
      %cst_29 = arith.constant dense<0.000000e+00> : vector<8x256xf32>
      %35 = tpu.matmul %33, %34, %cst_29 {dimension_numbers = #tpu.dot_dimension_numbers<[1], [0], [0], [1], [0, 0, 1, 1], [], []>} : vector<8x128xbf16>, vector<128x256xbf16>, vector<8x256xf32> -> vector<8x256xf32>
      %36 = arith.truncf %35 : vector<8x256xf32> to vector<8x256xbf16>
      %37 = vector.shape_cast %36 : vector<8x256xbf16> to vector<1x8x256xbf16>
      %38 = vector.extract_strided_slice %37 {offsets = [0, 0, 0], sizes = [1, 8, 128], strides = [1, 1, 1]} : vector<1x8x256xbf16> to vector<1x8x128xbf16>
      %c0_30 = arith.constant 0 : index
      %c0_31 = arith.constant 0 : index
      %c0_32 = arith.constant 0 : index
      %39 = vector.load %arg8[%c0_30, %c0_31, %c0_32] : memref<1x8x128xbf16, #tpu.memory_space<vmem>>, vector<1x8x128xbf16>
      tpu.vector_store %arg8[%c0_30, %c0_31, %c0_32], %38 {strides = array<i32>} : memref<1x8x128xbf16, #tpu.memory_space<vmem>>, vector<1x8x128xbf16>,
      %40 = vector.extract_strided_slice %37 {offsets = [0, 0, 128], sizes = [1, 8, 128], strides = [1, 1, 1]} : vector<1x8x256xbf16> to vector<1x8x128xbf16>
      %c0_33 = arith.constant 0 : index
      %c0_34 = arith.constant 0 : index
      %c0_35 = arith.constant 0 : index
      %41 = vector.load %arg9[%c0_33, %c0_34, %c0_35] : memref<1x8x128xbf16, #tpu.memory_space<vmem>>, vector<1x8x128xbf16>
      tpu.vector_store %arg9[%c0_33, %c0_34, %c0_35], %40 {strides = array<i32>} : memref<1x8x128xbf16, #tpu.memory_space<vmem>>, vector<1x8x128xbf16>,
    } else {
    }
    %c0 = arith.constant 0 : index
    %c0_1 = arith.constant 0 : index
    %c0_2 = arith.constant 0 : index
    %3 = vector.load %arg2[%c0, %c0_1, %c0_2] : memref<1x8x128xbf16, #tpu.memory_space<vmem>>, vector<1x8x128xbf16>
    %4 = vector.shape_cast %3 : vector<1x8x128xbf16> to vector<8x128xbf16>
    %c0_3 = arith.constant 0 : index
    %c0_4 = arith.constant 0 : index
    %5 = vector.load %arg3[%c0_3, %c0_4] : memref<128x128xbf16, #tpu.memory_space<vmem>>, vector<128x128xbf16>
    %cst = arith.constant dense<0.000000e+00> : vector<8x128xf32>
    %6 = tpu.matmul %4, %5, %cst {dimension_numbers = #tpu.dot_dimension_numbers<[1], [0], [0], [1], [0, 0, 1, 1], [], []>} : vector<8x128xbf16>, vector<128x128xbf16>, vector<8x128xf32> -> vector<8x128xf32>
    %7 = arith.truncf %6 : vector<8x128xf32> to vector<8x128xbf16>
    %8 = vector.shape_cast %7 : vector<8x128xbf16> to vector<1x8x128xbf16>
    %c0_5 = arith.constant 0 : index
    %c0_6 = arith.constant 0 : index
    %c0_7 = arith.constant 0 : index
    %9 = vector.load %arg8[%c0_5, %c0_6, %c0_7] : memref<1x8x128xbf16, #tpu.memory_space<vmem>>, vector<1x8x128xbf16>
    %cst_8 = arith.constant dense<0.000000e+00> : vector<1x8x8xf32>
    %10 = tpu.matmul %8, %9, %cst_8 {dimension_numbers = #tpu.dot_dimension_numbers<[2], [2], [1], [1], [0, 0, 0, 1, 1, 1], [0], [0]>} : vector<1x8x128xbf16>, vector<1x8x128xbf16>, vector<1x8x8xf32> -> vector<1x8x8xf32>
    %cst_9 = arith.constant dense<0xFF800000> : vector<1x8xf32>
    %11 = vector.multi_reduction <maximumf>, %10, %cst_9 [2] : vector<1x8x8xf32> to vector<1x8xf32>
    %12 = vector.shape_cast %11 : vector<1x8xf32> to vector<1x8x1xf32>
    %13 = vector.broadcast %12 : vector<1x8x1xf32> to vector<1x8x8xf32>
    %14 = arith.subf %10, %13 : vector<1x8x8xf32>
    %15 = math.exp %14 : vector<1x8x8xf32>
    %cst_10 = arith.constant dense<0.000000e+00> : vector<1x8xf32>
    %16 = vector.multi_reduction <add>, %15, %cst_10 [2] : vector<1x8x8xf32> to vector<1x8xf32>
    %17 = vector.shape_cast %16 : vector<1x8xf32> to vector<1x8x1xf32>
    %18 = tpu.reciprocal %17 : vector<1x8x1xf32> -> vector<1x8x1xf32>
    %19 = vector.broadcast %18 : vector<1x8x1xf32> to vector<1x8x8xf32>
    %20 = arith.mulf %15, %19 : vector<1x8x8xf32>
    %21 = arith.truncf %20 : vector<1x8x8xf32> to vector<1x8x8xbf16>
    %c0_11 = arith.constant 0 : index
    %c0_12 = arith.constant 0 : index
    %c0_13 = arith.constant 0 : index
    %22 = vector.load %arg9[%c0_11, %c0_12, %c0_13] : memref<1x8x128xbf16, #tpu.memory_space<vmem>>, vector<1x8x128xbf16>
    %cst_14 = arith.constant dense<0.000000e+00> : vector<1x8x128xf32>
    %23 = tpu.matmul %21, %22, %cst_14 {dimension_numbers = #tpu.dot_dimension_numbers<[2], [1], [1], [2], [0, 0, 0, 1, 1, 2], [0], [0]>} : vector<1x8x8xbf16>, vector<1x8x128xbf16>, vector<1x8x128xf32> -> vector<1x8x128xf32>
    %24 = vector.shape_cast %23 : vector<1x8x128xf32> to vector<8x128xf32>
    %25 = arith.truncf %24 : vector<8x128xf32> to vector<8x128xbf16>
    %c0_15 = arith.constant 0 : index
    %c0_16 = arith.constant 0 : index
    %26 = vector.load %arg5[%c0_15, %c0_16] : memref<128x128xbf16, #tpu.memory_space<vmem>>, vector<128x128xbf16>
    %cst_17 = arith.constant dense<0.000000e+00> : vector<8x128xf32>
    %27 = tpu.matmul %25, %26, %cst_17 {dimension_numbers = #tpu.dot_dimension_numbers<[1], [0], [0], [1], [0, 0, 1, 1], [], []>} : vector<8x128xbf16>, vector<128x128xbf16>, vector<8x128xf32> -> vector<8x128xf32>
    %28 = vector.shape_cast %27 : vector<8x128xf32> to vector<1x8x128xf32>
    %c0_18 = arith.constant 0 : index
    %c0_19 = arith.constant 0 : index
    %c0_20 = arith.constant 0 : index
    %29 = vector.load %arg6[%c0_18, %c0_19, %c0_20] : memref<1x8x128xf32, #tpu.memory_space<vmem>>, vector<1x8x128xf32>
    tpu.vector_store %arg6[%c0_18, %c0_19, %c0_20], %28 {strides = array<i32>} : memref<1x8x128xf32, #tpu.memory_space<vmem>>, vector<1x8x128xf32>,
    %30 = arith.truncf %20 : vector<1x8x8xf32> to vector<1x8x8xbf16>
    %c0_21 = arith.constant 0 : index
    %c0_22 = arith.constant 0 : index
    %c0_23 = arith.constant 0 : index
    %31 = vector.load %arg7[%c0_21, %c0_22, %c0_23] : memref<1x8x8xbf16, #tpu.memory_space<vmem>>, vector<1x8x8xbf16>
    tpu.vector_store %arg7[%c0_21, %c0_22, %c0_23], %30 {strides = array<i32>} : memref<1x8x8xbf16, #tpu.memory_space<vmem>>, vector<1x8x8xbf16>,
    return
  }
  func.func @transform_0(%arg0: i32, %arg1: i32) -> (i32, i32, i32) {
    %c0_i32 = arith.constant 0 : i32
    %c0_i32_0 = arith.constant 0 : i32
    %c0_i32_1 = arith.constant 0 : i32
    return %arg0, %c0_i32, %c0_i32_0 : i32, i32, i32
  }
  func.func @transform_1(%arg0: i32, %arg1: i32) -> (i32, i32) {
    %c0_i32 = arith.constant 0 : i32
    %c0_i32_0 = arith.constant 0 : i32
    %c0_i32_1 = arith.constant 0 : i32
    return %c0_i32, %c0_i32_0 : i32, i32
  }
  func.func @transform_2(%arg0: i32, %arg1: i32) -> (i32, i32) {
    %c0_i32 = arith.constant 0 : i32
    %c0_i32_0 = arith.constant 0 : i32
    %c0_i32_1 = arith.constant 0 : i32
    return %c0_i32, %c0_i32_0 : i32, i32
  }
  func.func @transform_3(%arg0: i32, %arg1: i32) -> (i32, i32) {
    %c0_i32 = arith.constant 0 : i32
    %c0_i32_0 = arith.constant 0 : i32
    %c0_i32_1 = arith.constant 0 : i32
    return %c0_i32, %c0_i32_0 : i32, i32
  }
  func.func @transform_4(%arg0: i32, %arg1: i32) -> (i32, i32, i32) {
    %c0_i32 = arith.constant 0 : i32
    %c0_i32_0 = arith.constant 0 : i32
    return %arg0, %arg1, %c0_i32 : i32, i32, i32
  }
  func.func @transform_5(%arg0: i32, %arg1: i32) -> (i32, i32, i32) {
    %c0_i32 = arith.constant 0 : i32
    %c0_i32_0 = arith.constant 0 : i32
    return %arg0, %arg1, %c0_i32 : i32, i32, i32
  }
}

</mosaic_0001>

<bundles_post_ra>
// kernel: tpu_custom_call.1
= control target key start
LH: loop header
LB: loop body
LE: loop exit
PB: predicated region body
PF: predicated region fallthrough
CT: control target
= control target key end

     0   :  { %s1852_s0 = inlined_call_operand.hbm [shape: bf16[2,8,128], index: 0, kind: input, shape index: {}]   ;;  %s1853_s1 = inlined_call_operand.hbm [shape: bf16[128,128], index: 1, kind: input, shape index: {}]   ;;  %s1854_s2 = inlined_call_operand.hbm [shape: bf16[128,256], index: 2, kind: input, shape index: {}]   ;;  %s1855_s3 = inlined_call_operand.hbm [shape: bf16[128,128], index: 3, kind: input, shape index: {}]   ;;  %s1856_s4 = inlined_call_operand.hbm [shape: f32[2,8,128], index: 4, kind: output, shape index: {0}]   ;;  %s1857_s5 = inlined_call_operand.hbm [shape: bf16[2,8,8], index: 5, kind: output, shape index: {1}]  }
   0x1   :  { %1865 = sst [smem:[#allocation21_spill]] %s1853_s1 }
   0x2   :  { %11 = vsyncpa [#allocation5], 0 }
   0x3   :  { %13 = vsyncpa [#allocation5 + $0x1], 0 }
   0x4   :  { %14 = vsyncpa [#allocation8], 0 }
   0x5   :  { %15 = vsyncpa [#allocation11], 0 }
   0x6   :  { %16 = vsyncpa [#allocation6], 0 }
   0x7   :  { %18 = vsyncpa [#allocation6 + $0x1], 0 }
   0x8   :  { %19 = vsyncpa [#allocation14], 0 }
   0x9   :  { %21 = vsyncpa [#allocation14 + $0x1], 0  ;;  %s1508_s18 = smov 0   ;;  %s1510_s19 = smov 0  }
   0xa   :  { %s1512_s20 = smov 0   ;;  %s1514_s21 = smov 0  }
   0xb   :  { %s1516_s22 = smov 0   ;;  %s1518_s23 = smov 0  }
   0xc LB: > { %s949_s24 = sadd.s32 4294967295, %s1463_s23   ;;  %s950_s25 = sadd.s32 4294967294, %s1463_s23   ;;  %s1463_s23 = sphi %s1518_s23, %s27_s23   ;;  %s1459_s22 = sphi %s1516_s22, %s1891_s22   ;;  %s1455_s21 = sphi %s1514_s21, %s1890_s21   ;;  %s1451_s20 = sphi %s1512_s20, %s1889_s20   ;;  %s1447_s19 = sphi %s1510_s19, %s1888_s19   ;;  %s1443_s18 = sphi %s1508_s18, %s1887_s18  }
   0xd   : > { %p59_p0 = scmp.ne.s32.totalorder %s1447_s19, %s1443_s18  ;;  %p1542_p1 = scmp.eq.s32.totalorder %s949_s24, 0 }
   0xe   : > { %p1546_p2 = scmp.eq.s32.totalorder %s949_s24, 1  ;;  %p154_p3 = scmp.eq.s32.totalorder %s950_s25, 1 }
   0xf   : > { %s1866_s26 = scalar_select %p1542_p1, 1, 0 }
  0x10   : > { %s1867_s27 = scalar_select %p1546_p2, 1, 0 }
  0x11   : > { %p1552_p4 = por %p1542_p1, %p59_p0  ;;  %p951_p5 = scmp.ge.s32.totalorder %s1463_s23, 1 }
  0x12   : > { %p1557_p6 = por %p154_p3, %p59_p0  ;;  %p189_p7 = scmp.lt.s32.totalorder %s1463_s23, 3 }
  0x13   : > { %s1868_s28 = scalar_select %p1552_p4, 1, 0 }
  0x14   : > { %s1869_s29 = scalar_select %p1557_p6, 1, 0 }
  0x15   : > { %p1562_p8 = pnand %p951_p5, %p189_p7  ;;  %s1465_s6 = smov [#allocation7]  }
  0x16   : > { %1870 = sst [smem:[#allocation20_spill]] %s1869_s29  ;;  %s201_s7 = sshll.u32 %s1465_s6, 4  ;;  %s1566_s7 = int_to_ptr.vmem [resolvable:$true] %s201_s7 }
  0x17   : > { %s1871_s30 = scalar_select %p1562_p8, 1, 0 }
  0x18   : > { %p1096_p9 = pneg %p1562_p8  ;;  %s1466_s9 = smov [#allocation9]  }
  0x19   : > { %s214_s10 = sshll.u32 %s1466_s9, 4  ;;  %s1873_s1 = sld [smem:[#allocation21_spill]]  ;;  %s1577_s10 = int_to_ptr.vmem [resolvable:$true] %s214_s10 }
  0x1a   : > { %p1573_p11 = pnand %p1096_p9, %p1542_p1 }
  0x1c   : > { %p1587_p13 = pneg %p1573_p11 }
  0x1f   : > { %s1227_s13 = scalar_lea.hbm %s1873_s1, 1024 }
  0x20   : > { %p1228_p12 = scmp.ne.s32.totalorder %s1873_s1, %s1227_s13  ;;  %p1234_p5 = scmp.lt.u32.totalorder %s1227_s13, %s1873_s1 }
  0x22   : > { %p1230_p0 = pnand %p1587_p13, %p1228_p12 }
  0x24   : > { %p1231_p3 = pneg %p1230_p0 }
  0x26   : > { %p1236_p7 = pnand %p1234_p5, %p1231_p3 }
  0x28   : > { %1239 = shalt.err (!%p1236_p7)
}
  0x29   : > { %s1240_s25 = scalar_lea.vmem %s1566_s7, 1024  ;;  %p1248_p1 = scmp.lt.s32.totalorder %s1566_s7, %s1566_s7 }
  0x2a   : > { %p1241_p9 = scmp.ne.s32.totalorder %s1566_s7, %s1240_s25  ;;  %p1249_p4 = scmp.lt.s32.totalorder %s1240_s25, %s1240_s25 }
  0x2c   : > { %p1243_p10 = pnand %p1241_p9, %p1587_p13  ;;  %p1250_p12 = por %p1249_p4, %p1248_p1 }
  0x2e   : > { %p1244_p6 = pneg %p1243_p10 }
  0x30   : > { %p1251_p0 = pnand %p1250_p12, %p1244_p6 }
  0x32   : > { %1254 = shalt.err (!%p1251_p0)
}
  0x33   : > { %s1862_s6 = smov 64   ;;  %s1863_s9 = smov 4  }
  0x34   : > { %1099 = dma.hbm_to_vmem [thread:$0]  (!%p1573_p11), %s1873_s1, 1024, %s1566_s7, [#allocation8], %s1862_s6, %s1862_s6, %s1863_s9  }
  0x35   : > { %s1255_s15 = scalar_lea.hbm %s1854_s2, 2048 }
  0x36   : > { %p1256_p1 = scmp.ne.s32.totalorder %s1854_s2, %s1255_s15  ;;  %p1262_p10 = scmp.lt.u32.totalorder %s1255_s15, %s1854_s2 }
  0x38   : > { %p1258_p4 = pnand %p1256_p1, %p1587_p13 }
  0x3a   : > { %p1259_p6 = pneg %p1258_p4 }
  0x3c   : > { %p1264_p3 = pnand %p1262_p10, %p1259_p6 }
  0x3e   : > { %1267 = shalt.err (!%p1264_p3)
}
  0x3f   : > { %s1268_s7 = scalar_lea.vmem %s1577_s10, 2048  ;;  %p1276_p12 = scmp.lt.s32.totalorder %s1577_s10, %s1577_s10 }
  0x40   : > { %p1269_p5 = scmp.ne.s32.totalorder %s1577_s10, %s1268_s7  ;;  %p1277_p0 = scmp.lt.s32.totalorder %s1268_s7, %s1268_s7 }
  0x42   : > { %p1271_p7 = pnand %p1269_p5, %p1587_p13  ;;  %p1278_p1 = por %p1277_p0, %p1276_p12 }
  0x44   : > { %p1272_p9 = pneg %p1271_p7 }
  0x46   : > { %p1279_p4 = pnand %p1278_p1, %p1272_p9 }
  0x48   : > { %1282 = shalt.err (!%p1279_p4)
}
  0x49   : > { %s1469_s11 = smov 128   ;;  %s1470_s29 = smov 8  }
  0x4a   : > { %1102 = dma.hbm_to_vmem [thread:$0]  (!%p1573_p11), %s1854_s2, 2048, %s1577_s10, [#allocation8], %s1469_s11, %s1469_s11, %s1470_s29  }
  0x4b   : > { %s1471_s14 = smov [#allocation10]   ;;  %s1283_s25 = scalar_lea.hbm %s1855_s3, 1024 }
  0x4c   : > { %s227_s15 = sshll.u32 %s1471_s14, 4  ;;  %p1284_p6 = scmp.ne.s32.totalorder %s1855_s3, %s1283_s25  ;;  %s228_s15 = int_to_ptr.vmem [resolvable:$true] %s227_s15 }
  0x4d   : > { %p1290_p5 = scmp.lt.u32.totalorder %s1283_s25, %s1855_s3 }
  0x4e   : > { %p1286_p10 = pnand %p1284_p6, %p1587_p13 }
  0x50   : > { %p1287_p3 = pneg %p1286_p10 }
  0x52   : > { %p1292_p7 = pnand %p1290_p5, %p1287_p3 }
  0x54   : > { %1295 = shalt.err (!%p1292_p7)
}
  0x55   : > { %s1296_s10 = scalar_lea.vmem %s228_s15, 1024  ;;  %p1304_p1 = scmp.lt.s32.totalorder %s228_s15, %s228_s15 }
  0x56   : > { %p1297_p9 = scmp.ne.s32.totalorder %s228_s15, %s1296_s10  ;;  %p1305_p4 = scmp.lt.s32.totalorder %s1296_s10, %s1296_s10 }
  0x58   : > { %p1299_p12 = pnand %p1297_p9, %p1587_p13  ;;  %p1306_p8 = por %p1305_p4, %p1304_p1 }
  0x5a   : > { %p1300_p0 = pneg %p1299_p12 }
  0x5c   : > { %p1307_p2 = pnand %p1306_p8, %p1300_p0 }
  0x5e   : > { %1310 = shalt.err (!%p1307_p2)
}
  0x5f   : > { %s1875_s6 = smov 4   ;;  %s1876_s11 = smov 64  }
  0x60   : > { %1105 = dma.hbm_to_vmem [thread:$0]  (!%p1573_p11), %s1855_s3, 1024, %s228_s15, [#allocation11], %s1876_s11, %s1876_s11, %s1875_s6  }
  0x61   : > { %s39_s16 = sadd.s32 1, %s1459_s22  ;;  %s46_s8 = sadd.s32 1, %s1451_s20 }
  0x62   : > { %p41_p2 = scmp.ge.s32.totalorder %s39_s16, 2  ;;  %p53_p8 = scmp.ne.s32.totalorder %s1451_s20, %s1447_s19 }
  0x63   : > { %p54_p13 = scmp.eq.s32.totalorder %s1463_s23, 0  ;;  %p1878_p10 = scmp.ne.s32.totalorder %s1867_s27, 0 }
  0x64   : > { %s1893_s16 = smov (%p41_p2, %s39_s16), 0  ;;  %p1120_p11 = scmp.lt.s32.totalorder %s1463_s23, 2 }
  0x65   : > { %p1662_p6 = por %p54_p13, %p53_p8  ;;  %p1668_p3 = por %p1878_p10, %p53_p8 }
  0x66   : > { %s43_s13 = ssub.s32 %s1459_s22, %s1893_s16  ;;  %s241_s14 = sand.u32 1, %s1451_s20  }
  0x67   : > { %p44_p5 = scmp.eq.s32.totalorder %s43_s13, 0  ;;  %s956_s15 = sshll.u32 %s241_s14, 2 }
  0x68   : > { %s957_s24 = sshll.u32 %s1459_s22, 6  ;;  %s245_s27 = scalar_lea.vmem [#allocation4], %s956_s15 }
  0x69   : > { %s1677_s17 = scalar_select %p44_p5, %s1451_s20, %s46_s8  }
  0x6a   : > { %s1683_s10 = scalar_lea.hbm %s1852_s0, %s957_s24  ;;  %s252_s6 = sshll.u32 %s245_s27, 4  ;;  %s1685_s6 = int_to_ptr.vmem [resolvable:$true] %s252_s6 }
  0x6b   : > { %p1689_p7 = pnand %p1120_p11, %p1662_p6  ;;  %s242_s1 = scalar_lea.sflag [#allocation5], %s241_s14 }
  0x6c   : > { %s1311_s9 = scalar_lea.hbm %s1683_s10, 64  ;;  %s1316_s15 = scalar_lea.hbm %s1852_s0, 128 }
  0x6d   : > { %p1312_p9 = scmp.ne.s32.totalorder %s1683_s10, %s1311_s9  ;;  %p1313_p12 = pneg %p1689_p7 }
  0x6e   : > { %p1317_p4 = scmp.lt.u32.totalorder %s1683_s10, %s1852_s0  ;;  %p1318_p2 = scmp.lt.u32.totalorder %s1316_s15, %s1311_s9 }
  0x6f   : > { %p1314_p0 = pnand %p1313_p12, %p1312_p9  ;;  %p1320_p13 = scmp.lt.u32.totalorder %s1311_s9, %s1683_s10 }
  0x70   : > { %p1319_p8 = por %p1318_p2, %p1317_p4 }
  0x71   : > { %p1315_p1 = pneg %p1314_p0 }
  0x72   : > { %p1321_p6 = por %p1320_p13, %p1319_p8 }
  0x74   : > { %p1322_p10 = pnand %p1321_p6, %p1315_p1 }
  0x76   : > { %1325 = shalt.err (!%p1322_p10)
}
  0x77   : > { %s1326_s14 = scalar_lea.vmem %s1685_s6, 64  ;;  %s1472_s25 = smov [#allocation4]  }
  0x78   : > { %p1327_p11 = scmp.ne.s32.totalorder %s1685_s6, %s1326_s14  ;;  %s1331_s7 = sshll.u32 %s1472_s25, 4  ;;  %s1332_s7 = int_to_ptr.vmem [resolvable:$false] %s1331_s7 }
  0x79   : > { %s1333_s27 = scalar_lea.vmem %s1332_s7, 128  ;;  %p1334_p0 = scmp.lt.s32.totalorder %s1685_s6, %s1332_s7 }
  0x7a   : > { %p1329_p5 = pnand %p1327_p11, %p1313_p12  ;;  %p1335_p4 = scmp.lt.s32.totalorder %s1333_s27, %s1326_s14 }
  0x7c   : > { %p1330_p9 = pneg %p1329_p5  ;;  %p1336_p2 = por %p1335_p4, %p1334_p0 }
  0x7e   : > { %p1337_p8 = pnand %p1336_p2, %p1330_p9 }
  0x80   : > { %1340 = shalt.err (!%p1337_p8)
}
  0x81   : > { %1109 = dma.hbm_to_vmem [thread:$0]  (!%p1689_p7), %s1683_s10, 64, %s1685_s6, %s242_s1  }
  0x82   : > { %p1881_p1 = scmp.ne.s32.totalorder %s1871_s30, 0 }
  0x83   : > { %s1721_s9 = sand.u32 (!%p1881_p1), 1, %s1447_s19   ;;  %p1882_p12 = scmp.ne.s32.totalorder (!%p1881_p1), %s1868_s28, 0 }
  0x84   : > { %261 = sbr.rel (%p1881_p1) target bundleno = 1377 (0x561), region = 36  ;;  %s959_s8 = sshll.u32 (!%p1881_p1), %s1721_s9, 2 }
  0x85   : > { %s264_s13 = scalar_lea.sflag (!%p1881_p1), [#allocation5], %s1721_s9  ;;  %s1727_s15 = scalar_lea.vmem (!%p1881_p1), [#allocation4], %s959_s8 }
  0x8b   : > { %1422 = dma.done.wait (%p1882_p12), %s264_s13, 64  }
  0x8c   : > { %1424 = vsyncadd (%p1882_p12), %s264_s13, 4294967232  ;;  %p1883_p7 = scmp.ne.s32.totalorder %s1866_s26, 0 }
  0x8e   : > { %1426 = dma.done.wait (%p1883_p7), [#allocation8], 3072  }
  0x8f   : > { %1428 = vsyncadd (%p1883_p7), [#allocation8], 4294964224 }
  0x90   : > { %1430 = dma.done.wait (%p1883_p7), [#allocation11], 1024  }
  0x91   : > { %1432 = vsyncadd (%p1883_p7), [#allocation11], 4294966272  ;;  %v1473_v0 = vmov 0.0   ;;  %v1474_v1 = vmov 0   ;;  %vm1475_vm0 = vmmov 0   ;;  %v1195_v7 = vld [vmem:[#allocation7] sm:$0xff]  }
  0x92   : > { %1026 = vmatprep.subr.bf16.mxu1 %v1473_v0  ;;  %445 = vmatprep.mubr.bf16.mxu0 %v1474_v1  ;;  %v1183_v2 = vld [vmem:[#allocation9 + $0x4] ss:$8 sps:$4 sm:$0xff]   ;;  %v1185_v3 = vld [vmem:[#allocation9] ss:$8 sps:$4 sm:$0xff]   ;;  %v1186_v4 = vld [vmem:[#allocation9 + $0x14] ss:$8 sps:$4 sm:$0xff]  }
  0x93   : > { %1042 = vmatprep.mubr.msk.bf16.mxu1 %vm1475_vm0, %v1473_v0  ;;  %413 = vmatprep.subr.bf16.mxu0 %v1183_v2  ;;  %v1188_v5 = vld [vmem:[#allocation9 + $0x10] ss:$8 sps:$4 sm:$0xff]   ;;  %v1189_v6 = vld [vmem:[#allocation9 + $0x24] ss:$8 sps:$4 sm:$0xff]   ;;  %v1191_v8 = vld [vmem:[#allocation9 + $0x20] ss:$8 sps:$4 sm:$0xff]  }
  0x94   : > { %414 = vmatpush1.bf16.msra.mxu0 %v1185_v3  ;;  %v1192_v9 = vld [vmem:[#allocation9 + $0x34] ss:$8 sps:$4 sm:$0xff]   ;;  %1027 = vmatpush3.bf16.msra.mxu1 %v1195_v7  ;;  %v1199_v10 = vld [vmem:[#allocation7 + $0x8] sm:$0xff]   ;;  %v1194_v11 = vld [vmem:[#allocation9 + $0x30] ss:$8 sps:$4 sm:$0xff]   ;;  %vm622_vm1 = vcmask 1043456  }
  0x95   : > { %415 = vmatprep.subr.bf16.mxu0 %v1186_v4  ;;  %1028 = vmatprep.subr.bf16.mxu1 %v1473_v0  ;;  %v1196_v12 = vld [vmem:[#allocation9 + $0x44] ss:$8 sps:$4 sm:$0xff]   ;;  %v1203_v13 = vld [vmem:[#allocation7 + $0x10] sm:$0xff]   ;;  %v1198_v14 = vld [vmem:[#allocation9 + $0x40] ss:$8 sps:$4 sm:$0xff]   ;;  %vm605_vm2 = vcmask 64512  }
  0x96   : > { %v1200_v15 = vld [vmem:[#allocation9 + $0x54] ss:$8 sps:$4 sm:$0xff]   ;;  %v1202_v17 = vld [vmem:[#allocation9 + $0x50] ss:$8 sps:$4 sm:$0xff]   ;;  %v1204_v18 = vld [vmem:[#allocation9 + $0x64] ss:$8 sps:$4 sm:$0xff]  }
  0x97   : > { %v1207_v16 = vld [vmem:[#allocation7 + $0x18] sm:$0xff]   ;;  %v1211_v19 = vld [vmem:[#allocation7 + $0x20] sm:$0xff]   ;;  %v1212_v22 = vld [vmem:[#allocation7 + $0x28] sm:$0xff]   ;;  %vm772_vm3 = vcmask 60416   ;;  %s310_s26 = scalar_lea.vmem [#allocation13], %s959_s8  ;;  %s1001_s28 = sshll.u32 %s1455_s21, 6 }
  0x98   : > { %416 = vmatpush1.bf16.msra.mxu0 %v1188_v5  ;;  %1029 = vmatpush3.bf16.msra.mxu1 %v1199_v10  ;;  %v1206_v20 = vld [vmem:[#allocation9 + $0x60] ss:$8 sps:$4 sm:$0xff]   ;;  %v1208_v21 = vld [vmem:[#allocation9 + $0x74] ss:$8 sps:$4 sm:$0xff]   ;;  %v1210_v23 = vld [vmem:[#allocation9 + $0x70] ss:$8 sps:$4 sm:$0xff]   ;;  %s1778_s11 = scalar_lea.hbm %s1857_s5, %s1001_s28 }
  0x99   : > { %417 = vmatprep.subr.bf16.mxu0 %v1189_v6  ;;  %1030 = vmatprep.subr.bf16.mxu1 %v1473_v0  ;;  %v1213_v24 = vld [vmem:[#allocation7 + $0x30] sm:$0xff]   ;;  %v316_v25 = vld [vmem:[%s1727_s15] sm:$0xf]  ;;  %v1215_v52 = vld [vmem:[#allocation10] sm:$0xff]   ;;  %s808_s30 = sshll.u32 %s310_s26, 4  ;;  %s780_s1 = scalar_lea.sflag [#allocation14], %s1721_s9  ;;  %s809_s30 = int_to_ptr.vmem [resolvable:$true] %s808_s30 }
  0x9a   : > { %v1214_v26 = vld [vmem:[#allocation7 + $0x38] sm:$0xff]   ;;  %v1216_v53 = vld [vmem:[#allocation10 + $0x8] sm:$0xff]   ;;  %v1217_v54 = vld [vmem:[#allocation10 + $0x10] sm:$0xff]   ;;  %s1341_s29 = scalar_lea.vmem %s809_s30, 64  ;;  %s1476_s24 = smov [#allocation13]  }
  0x9b   : > { %v458_v27 = vld [vmem:[%s1727_s15] sm:$0xf]  ;;  %v1219_v56 = vld [vmem:[#allocation10 + $0x20] sm:$0xff]   ;;  %v1220_v57 = vld [vmem:[#allocation10 + $0x28] sm:$0xff]   ;;  %p1342_p13 = scmp.ne.s32.totalorder %s809_s30, %s1341_s29  ;;  %s1345_s14 = sshll.u32 %s1476_s24, 4  ;;  %s1346_s14 = int_to_ptr.vmem [resolvable:$false] %s1345_s14 }
  0x9c   : > { %418 = vmatpush1.bf16.msra.mxu0 %v1191_v8  ;;  %1031 = vmatpush3.bf16.msra.mxu1 %v1203_v13  ;;  %v1218_v55 = vld [vmem:[#allocation10 + $0x18] sm:$0xff]   ;;  %v1221_v58 = vld [vmem:[#allocation10 + $0x30] sm:$0xff]   ;;  %s1347_s25 = scalar_lea.vmem %s1346_s14, 128  ;;  %p1348_p11 = scmp.lt.s32.totalorder %s809_s30, %s1346_s14 }
  0x9d   : > { %419 = vmatprep.subr.bf16.mxu0 %v1192_v9  ;;  %1032 = vmatprep.subr.bf16.mxu1 %v1473_v0  ;;  %v1222_v63 = vld [vmem:[#allocation10 + $0x38] sm:$0xff]   ;;  %p1343_p6 = pnand %p1342_p13, %p1668_p3  ;;  %p1349_p5 = scmp.lt.s32.totalorder %s1347_s25, %s1341_s29 }
  0x9f   : > { %p1344_p10 = pneg %p1343_p6  ;;  %p1350_p9 = por %p1349_p5, %p1348_p11 }
  0xa0   : > { %420 = vmatpush1.bf16.msra.mxu0 %v1194_v11  ;;  %1033 = vmatpush3.bf16.msra.mxu1 %v1207_v16 }
  0xa1   : > { %421 = vmatprep.subr.bf16.mxu0 %v1196_v12  ;;  %1034 = vmatprep.subr.bf16.mxu1 %v1473_v0  ;;  %p1351_p0 = pnand %p1350_p9, %p1344_p10 }
  0xa4   : > { %422 = vmatpush1.bf16.msra.mxu0 %v1198_v14  ;;  %1035 = vmatpush3.bf16.msra.mxu1 %v1211_v19 }
  0xa5   : > { %423 = vmatprep.subr.bf16.mxu0 %v1200_v15  ;;  %1036 = vmatprep.subr.bf16.mxu1 %v1473_v0 }
  0xa8   : > { %424 = vmatpush1.bf16.msra.mxu0 %v1202_v17  ;;  %1037 = vmatpush3.bf16.msra.mxu1 %v1212_v22 }
  0xa9   : > { %425 = vmatprep.subr.bf16.mxu0 %v1204_v18  ;;  %1038 = vmatprep.subr.bf16.mxu1 %v1473_v0 }
  0xac   : > { %426 = vmatpush1.bf16.msra.mxu0 %v1206_v20  ;;  %1039 = vmatpush3.bf16.msra.mxu1 %v1213_v24 }
  0xad   : > { %427 = vmatprep.subr.bf16.mxu0 %v1208_v21  ;;  %1040 = vmatprep.subr.bf16.mxu1 %v1473_v0 }
  0xb0   : > { %428 = vmatpush1.bf16.msra.mxu0 %v1210_v23  ;;  %1041 = vmatpush3.bf16.msra.mxu1 %v1214_v26 }
  0xb1   : > { %1058 = vmatprep.subr.bf16.mxu0 %v1473_v0  ;;  %1046 = vmatprep.subr.bf16.mxu1 %v1473_v0 }
  0xb3   : > { %446 = vmatmul.mubr.bf16.vlgmr.msra.gmra.mrb[0].mxu0 %v316_v25  ;;  %1043 = vmatmul.mubr.bf16.vlgmr.msra.gmra.mrb[0].mxu1 %v458_v27 }
  0xb4   : > { %1074 = vmatprep.mubr.msk.bf16.mxu0 %vm1475_vm0, %v1473_v0  ;;  %1048 = vmatprep.mubr.msk.bf16.mxu1 %vm1475_vm0, %v1473_v0 }
  0xb5   : > { %1059 = vmatpush3.bf16.msra.mxu0 %v1215_v52 }
  0xb6   : > { %1060 = vmatprep.subr.bf16.mxu0 %v1473_v0 }
  0xb9   : > { %1061 = vmatpush3.bf16.msra.mxu0 %v1216_v53 }
  0xba   : > { %1062 = vmatprep.subr.bf16.mxu0 %v1473_v0 }
  0xbd   : > { %1063 = vmatpush3.bf16.msra.mxu0 %v1217_v54 }
  0xbe   : > { %1064 = vmatprep.subr.bf16.mxu0 %v1473_v0 }
  0xc1   : > { %1065 = vmatpush3.bf16.msra.mxu0 %v1218_v55 }
  0xc2   : > { %1066 = vmatprep.subr.bf16.mxu0 %v1473_v0 }
  0xc5   : > { %1067 = vmatpush3.bf16.msra.mxu0 %v1219_v56 }
  0xc6   : > { %1068 = vmatprep.subr.bf16.mxu0 %v1473_v0 }
  0xc9   : > { %1069 = vmatpush3.bf16.msra.mxu0 %v1220_v57 }
  0xca   : > { %1070 = vmatprep.subr.bf16.mxu0 %v1473_v0 }
  0xcd   : > { %1071 = vmatpush3.bf16.msra.mxu0 %v1221_v58 }
  0xce   : > { %1072 = vmatprep.subr.bf16.mxu0 %v1473_v0 }
  0xd1   : > { %1073 = vmatpush3.bf16.msra.mxu0 %v1222_v63 }
 0x186   : > { %v447_v28 = vpop.f32.mrb[0].mxu0  ;;  %v557_v34 = vpop.f32.mrb[0].mxu1 }
 0x187   : > { %v454_v29 = vpack.c.bf16 %v447_v28, %v447_v28  ;;  %v449_v30 = vpop.f32.mrb[1].mxu0  ;;  %v1044_v35 = vpop.f32.mrb[1].mxu1  ;;  %v563_v39 = vpack.c.bf16 %v557_v34, %v557_v34 }
 0x188   : > { %v455_v31 = vpack.c.bf16 %v449_v30, %v449_v30  ;;  %v451_v32 = vpop.f32.mrb[2].mxu0  ;;  %v560_v36 = vpop.f32.mrb[2].mxu1 }
 0x189   : > { %456 = vst [vmem:[#allocation2] sm:$0xf] %v454_v29  ;;  %v452_v33 = vpop.f32.mrb[3].mxu0  ;;  %v1045_v37 = vpop.f32.mrb[3].mxu1 }
 0x18a   : > { %457 = vst [vmem:[#allocation3] sm:$0xf] %v455_v31 }
 0x190   : > { %v564_v38 = vld [vmem:[#allocation2] sm:$0xf] }
 0x191   : > { %1047 = vmatpush3.bf16.xpose.msra.mxu1 %v564_v38  ;;  %v618_v40 = vld [vmem:[#allocation3] sm:$0xf] }
 0x192   : > { %1052 = vmatprep.subr.bf16.mxu1 %v1473_v0  ;;  %v624_v41 = vsel %vm622_vm1, %v618_v40, 0 }
 0x198   : > { %1049 = vmatmul.mubr.bf16.vlgmr.msra.gmra.mrb[4].mxu1 %v563_v39 }
 0x199   : > { %1053 = vmatpush3.bf16.msra.mxu1 %v624_v41  ;;  %1054 = vmatprep.mubr.msk.bf16.mxu1 %vm1475_vm0, %v1473_v0 }
 0x26b   : > { %v599_v42 = vpop.f32.mrb[4].mxu1 }
 0x26c   : > { %v1050_v43 = vpop.f32.mrb[5].mxu1  ;;  %v606_v44 = vsel %vm605_vm2, %v599_v42, -inf }
 0x26d   : > { %607 = vmax.xlane.f32.xlu0 %v606_v44  ;;  %v602_v45 = vpop.f32.mrb[6].mxu1 }
 0x26e   : > { %v1051_v46 = vpop.f32.mrb[7].mxu1 }
 0x2fa   : > { %v608_v47 = vpop.xlane.xlu0 %607 }
 0x2fb   : > { %v609_v48 = vsub.f32 %v599_v42, %v608_v47 }
 0x2fd   : > { %v610_v49 = vmul.f32 1.442695, %v609_v48 }
 0x2ff   : > { %1223 = vpow2.f32 %v610_v49 }
 0x309   : > { %v1224_v50 = vpop.eup %1223 }
 0x30a   : > { %v612_v51 = vsel %vm605_vm2, %v1224_v50, 0.0 }
 0x30b   : > { %613 = vadd.xlane.f32.xlu0 %v612_v51 }
 0x398   : > { %v614_v59 = vpop.xlane.xlu0 %613 }
 0x399   : > { %1225 = vrcp.f32 %v614_v59 }
 0x3a3   : > { %v1226_v60 = vpop.eup %1225 }
 0x3a4   : > { %v616_v61 = vmul.f32 %v1226_v60, %v1224_v50 }
 0x3a6   : > { %v617_v62 = vpack.c.bf16 %v616_v61, %v616_v61 }
 0x3a8   : > { %1055 = vmatmul.mubr.msk.bf16.vlgmr.msra.gmra.mrb[8].mxu1 %vm605_vm2, %v617_v62  ;;  %773 = vst.msk [vmem:[%s310_s26] sm:$0xf] %vm772_vm3, %v617_v62 }
 0x47b   : > { %v660_v1 = vpop.f32.mrb[8].mxu1 }
 0x47c   : > { %v666_v2 = vpack.c.bf16 %v660_v1, %v660_v1  ;;  %v1056_v3 = vpop.f32.mrb[9].mxu1 }
 0x47d   : > { %v663_v0 = vpop.f32.mrb[10].mxu1 }
 0x47e   : > { %v1057_v4 = vpop.f32.mrb[11].mxu1  ;;  %1075 = vmatmul.mubr.bf16.vlgmr.msra.gmra.mrb[4].mxu0 %v666_v2 }
 0x47f   : > { %1354 = shalt.err (!%p1351_p0)
}
 0x480   : > { %s1355_s7 = scalar_lea.hbm %s1778_s11, 64  ;;  %s1359_s13 = scalar_lea.hbm %s1857_s5, 128 }
 0x481   : > { %p1356_p4 = scmp.ne.s32.totalorder %s1778_s11, %s1355_s7  ;;  %p1360_p1 = scmp.lt.u32.totalorder %s1778_s11, %s1857_s5 }
 0x482   : > { %p1361_p12 = scmp.lt.u32.totalorder %s1359_s13, %s1355_s7  ;;  %p1363_p13 = scmp.lt.u32.totalorder %s1355_s7, %s1778_s11 }
 0x483   : > { %p1357_p2 = pnand %p1356_p4, %p1668_p3 }
 0x484   : > { %p1362_p7 = por %p1361_p12, %p1360_p1 }
 0x485   : > { %p1358_p8 = pneg %p1357_p2 }
 0x486   : > { %p1364_p6 = por %p1363_p13, %p1362_p7 }
 0x488   : > { %p1365_p10 = pnand %p1364_p6, %p1358_p8 }
 0x48a   : > { %1368 = shalt.err (!%p1365_p10)
}
 0x48b   : > { %1093 = dma.vmem_to_hbm [thread:$0]  (%p1668_p3), %s809_s30, 64, %s1778_s11, %s780_s1  }
 0x48c   : > { %s963_s28 = sshll.u32 %s1721_s9, 3  ;;  %s1000_s29 = sshll.u32 %s1455_s21, 7 }
 0x48d   : > { %s303_s10 = scalar_lea.vmem [#allocation12], %s963_s28  ;;  %s1805_s25 = scalar_lea.hbm %s1856_s4, %s1000_s29 }
 0x48e   : > { %s794_s6 = sshll.u32 %s303_s10, 4  ;;  %s775_s7 = scalar_lea.sflag [#allocation6], %s1721_s9  ;;  %s1800_s6 = int_to_ptr.vmem [resolvable:$true] %s794_s6 }
 0x48f   : > { %s1369_s30 = scalar_lea.vmem %s1800_s6, 128  ;;  %s1477_s21 = smov [#allocation12]  }
 0x490   : > { %p1370_p11 = scmp.ne.s32.totalorder %s1800_s6, %s1369_s30  ;;  %s1373_s11 = sshll.u32 %s1477_s21, 4  ;;  %s1374_s11 = int_to_ptr.vmem [resolvable:$false] %s1373_s11 }
 0x491   : > { %s1375_s1 = scalar_lea.vmem %s1374_s11, 256  ;;  %p1376_p0 = scmp.lt.s32.totalorder %s1800_s6, %s1374_s11 }
 0x492   : > { %p1371_p5 = pnand %p1370_p11, %p1668_p3  ;;  %p1377_p4 = scmp.lt.s32.totalorder %s1375_s1, %s1369_s30 }
 0x494   : > { %p1372_p9 = pneg %p1371_p5  ;;  %p1378_p2 = por %p1377_p4, %p1376_p0 }
 0x496   : > { %p1379_p8 = pnand %p1378_p2, %p1372_p9 }
 0x551   : > { %v765_v5 = vpop.f32.mrb[4].mxu0 }
 0x552   : > { %771 = vst [vmem:[%s303_s10] sm:$0xff] %v765_v5  ;;  %v1076_v6 = vpop.f32.mrb[5].mxu0 }
 0x553   : > { %v768_v7 = vpop.f32.mrb[6].mxu0 }
 0x554   : > { %1382 = shalt.err (!%p1379_p8)
}
 0x555   : > { %s1383_s9 = scalar_lea.hbm %s1805_s25, 128  ;;  %s1387_s13 = scalar_lea.hbm %s1856_s4, 256 }
 0x556   : > { %p1384_p1 = scmp.ne.s32.totalorder %s1805_s25, %s1383_s9  ;;  %p1388_p13 = scmp.lt.u32.totalorder %s1805_s25, %s1856_s4 }
 0x557   : > { %p1389_p6 = scmp.lt.u32.totalorder %s1387_s13, %s1383_s9  ;;  %p1391_p11 = scmp.lt.u32.totalorder %s1383_s9, %s1805_s25 }
 0x558   : > { %p1385_p12 = pnand %p1384_p1, %p1668_p3 }
 0x559   : > { %p1390_p10 = por %p1389_p6, %p1388_p13 }
 0x55a   : > { %p1386_p7 = pneg %p1385_p12 }
 0x55b   : > { %p1392_p5 = por %p1391_p11, %p1390_p10 }
 0x55d   : > { %p1393_p9 = pnand %p1392_p5, %p1386_p7 }
 0x55f   : > { %1396 = shalt.err (!%p1393_p9)
}
 0x560   : > { %1092 = dma.vmem_to_hbm [thread:$0]  (%p1668_p3), %s1800_s6, 128, %s1805_s25, %s775_s7   ;;  %v1077_v8 = vpop.f32.mrb[7].mxu0 }
 0x561 PF: > { %s1884_s28 = sld [smem:[#allocation20_spill]]  ;;  %s820_s10 = sand.u32 1, %s1443_s18  }
 0x562   : > { %p1886_p4 = scmp.ge.s32.totalorder %s1463_s23, 2  ;;  %s821_s29 = scalar_lea.sflag [#allocation6], %s820_s10 }
 0x567   : > { %p1885_p0 = scmp.ne.s32.totalorder %s1884_s28, 0 }
 0x569   : > { %p1111_p2 = pnand %p1886_p4, %p1885_p0 }
 0x56b   : > { %1434 = dma.done.wait (!%p1111_p2), %s821_s29, 128  }
 0x56c   : > { %1436 = vsyncadd (!%p1111_p2), %s821_s29, 4294967168  ;;  %s830_s24 = scalar_lea.sflag [#allocation14], %s820_s10 }
 0x56d   : > { %1438 = dma.done.wait (!%p1111_p2), %s830_s24, 64  }
 0x56e   : > { %1440 = vsyncadd (!%p1111_p2), %s830_s24, 4294967232  ;;  %s27_s23 = sadd.s32 1, %s1463_s23   ;;  %s1887_s18 = smov %s1447_s19 }
 0x56f   : > { %p24_p8 = scmp.ge.s32.totalorder %s27_s23, 4   ;;  %s1888_s19 = smov %s1451_s20 }
 0x570   : > { %s1889_s20 = smov %s1677_s17  ;;  %s1890_s21 = smov %s1459_s22 }
 0x571   : > { %s1891_s22 = smov %s1893_s16  ;;  %26 = sbr.rel (!%p24_p8) target bundleno = 12 (0xc), region = 114 }
 0x578   :  { %835 = vsyncpa [#allocation5], 1 }
 0x579   :  { %837 = vsyncpa [#allocation5 + $0x1], 1 }
 0x57a   :  { %838 = vsyncpa [#allocation8], 1 }
 0x57b   :  { %839 = vsyncpa [#allocation11], 1 }
 0x57c   :  { %840 = vsyncpa [#allocation6], 1 }
 0x57d   :  { %842 = vsyncpa [#allocation6 + $0x1], 1 }
 0x57e   :  { %843 = vsyncpa [#allocation14], 1 }
 0x57f   :  { %845 = vsyncpa [#allocation14 + $0x1], 1 }

</bundles_post_ra>
